<compile_context>
chip_gen: v7x
topology: tpu7x:2x2x1
jax: 0.10.0
libtpu: 0.0.40
codegen_flags: <defaults>
</compile_context>

<pallas_src>
import functools

import jax
import jax.numpy as jnp
from jax.experimental import pallas as pl
from jax.experimental.pallas import tpu as pltpu


# ----------------------------------------------------------------------------
# Trace-time hardware queries (with safe fallbacks).
# ----------------------------------------------------------------------------
def _vmem_capacity_bytes():
    try:
        return int(pltpu.get_tpu_info().vmem_capacity_bytes)
    except Exception:
        return 64 * 2 ** 20          # v7x-safe fallback


def _exp_supports_bf16():
    # bf16 EUP exists on v6e / v7x only; keep exp in f32 elsewhere (v5e, v4, ...).
    try:
        kind = jax.devices()[0].device_kind.lower()
    except Exception:
        return False
    return ("v6" in kind) or ("v7" in kind) or ("7x" in kind)


# ----------------------------------------------------------------------------
# Pallas kernel: grid = (batch, query_tile).  No cross-iteration state.
# ----------------------------------------------------------------------------
def _attn_kernel(x1_ref, phit_ref, g_ref, wth_ref, wy_ref, wres_ref, b_ref,
                 out_ref, *, denom_col, exp_in_bf16):
    f32, bf16 = jnp.float32, jnp.bfloat16

    x1t = x1_ref[0]                                            # (TQ, C1) bf16

    # theta projection (conv_layer + theta fused in wrapper): bf16 x bf16, f32 acc
    theta = jnp.dot(x1t, wth_ref[...],
                    preferred_element_type=f32).astype(bf16)   # (TQ, Cip)

    # attention scores against the pre-transposed, lane-dense key cache
    s = jnp.dot(theta, phit_ref[0], preferred_element_type=f32)  # (TQ, N)
    s = s - jnp.max(s, axis=-1, keepdims=True)

    if denom_col is not None:
        # g carries a ones column at `denom_col`: the softmax denominator comes
        # out of the MXU matmul with exact f32 accumulation (no XLU row-reduce).
        p = jnp.exp(s.astype(bf16)) if exp_in_bf16 else jnp.exp(s).astype(bf16)
        y = jnp.dot(p, g_ref[0], preferred_element_type=f32)   # (TQ, Cip)
        denom = y[:, denom_col:denom_col + 1]                  # (TQ, 1)
    else:
        # Ci already a multiple of 128 -> no spare column; classic path.
        p32 = jnp.exp(s)
        denom = jnp.sum(p32, axis=-1, keepdims=True)
        y = jnp.dot(p32.astype(bf16), g_ref[0], preferred_element_type=f32)

    # deferred softmax normalization on the small (TQ, Cip) result
    # (approx reciprocal: ~1e-3 relative error, acceptable for this module)
    y = (y * pl.reciprocal(denom, approx=True)).astype(bf16)

    # W-conv (BN folded) + residual + out_layer, pre-fused into two matmuls
    out = (jnp.dot(y, wy_ref[...], preferred_element_type=f32)
           + jnp.dot(x1t, wres_ref[...], preferred_element_type=f32)
           + b_ref[...])
    out_ref[0] = out                                           # lane-dense f32


# ----------------------------------------------------------------------------
# Wrapper: layout conversion, algebraic weight fusion, key-cache precompute,
# padding, pallas_call.
# ----------------------------------------------------------------------------
def nonlocal_correlation_forward(x1_nchw, x2_nchw, params, *, query_tile=None):
    f32, bf16 = jnp.float32, jnp.bfloat16

    B, C1, H, W = x1_nchw.shape
    B2, C2, H2, W2 = x2_nchw.shape
    assert B == B2 and (H, W) == (H2, W2)
    N = H * W

    x1 = jnp.transpose(x1_nchw, (0, 2, 3, 1)).reshape(B, N, C1)
    x2 = jnp.transpose(x2_nchw, (0, 2, 3, 1)).reshape(B, N, C2)

    wc = params["wc"].astype(f32)                              # (C2, Cm)
    Cm = wc.shape[1]
    if C1 == C2:                                               # mirrors torch `if`
        wc1 = wc
    else:
        assert C1 == Cm, "x1 must already carry mid_channels when C1 != C2"
        wc1 = jnp.eye(Cm, dtype=f32)                           # conv skipped on x1

    # Fold eval-mode BatchNorm of the nonlocal W branch into its 1x1 conv.
    eps = 1e-5
    scale = params["bn_gamma"] / jnp.sqrt(params["bn_var"] + eps)       # (Cm,)
    ww_s = params["ww"] * scale[None, :]                                # (Ci, Cm)
    bw = params["bn_beta"] - params["bn_mean"] * scale                  # (Cm,)

    wth, wph, wg = params["wtheta"], params["wphi"], params["wg"]       # (Cm, Ci)
    wout, bout = params["wout"], params["bout"]                         # (Cm,Cout)
    Ci, Cout = wth.shape[1], wout.shape[1]

    # Trace-time algebraic fusion of the 1x1-conv chain (zero kernel cost).
    wth_f = wc1 @ wth                                          # (C1, Ci)
    wphi_f = wc @ wph                                          # (C2, Ci)
    wg_f = wc @ wg                                             # (C2, Ci)
    wout_y = ww_s @ wout                                       # (Ci, Cout)
    wout_res = wc1 @ wout                                      # (C1, Cout)
    b_f = bw @ wout + bout                                     # (Cout,)

    # Lane-dense padding: Ci and Cout up to multiples of 128.
    Cip = max(128, ((Ci + 127) // 128) * 128)
    Coutp = max(128, ((Cout + 127) // 128) * 128)
    denom_col = Ci if Cip > Ci else None                       # spare ones column

    wth_b = jnp.pad(wth_f, ((0, 0), (0, Cip - Ci))).astype(bf16)            # (C1,Cip)
    wy_b = jnp.pad(wout_y, ((0, Cip - Ci), (0, Coutp - Cout))).astype(bf16)  # (Cip,Coutp)
    wres_b = jnp.pad(wout_res, ((0, 0), (0, Coutp - Cout))).astype(bf16)     # (C1,Coutp)
    b_b = jnp.pad(b_f, ((0, Coutp - Cout),))[None, :].astype(f32)            # (1,Coutp)

    # Key-side caches: phi/g depend only on x2 -> computed once per batch in
    # XLA (O(N*C) flops, dwarfed by the O(N^2) attention), stored bf16 and
    # lane-dense; phi pre-transposed so the score matmul is (TQ,Cip)@(Cip,N).
    x2f = x2.astype(f32)
    phi = jnp.einsum("bnc,cd->bnd", x2f, wphi_f)               # (B, N, Ci) f32
    g = jnp.einsum("bnc,cd->bnd", x2f, wg_f)                   # (B, N, Ci) f32
    phi_t = jnp.pad(jnp.transpose(phi, (0, 2, 1)),
                    ((0, 0), (0, Cip - Ci), (0, 0))).astype(bf16)   # (B, Cip, N)
    g_p = jnp.pad(g, ((0, 0), (0, 0), (0, Cip - Ci)))
    if denom_col is not None:
        g_p = g_p.at[:, :, denom_col].set(1.0)                 # denominator column
    g_b = g_p.astype(bf16)                                     # (B, N, Cip)

    x1_b = x1.astype(bf16)                                     # (B, N, C1)

    # --- query-tile selection (generation-aware, prefer a divisor of N) ------
    vmem_cap = _vmem_capacity_bytes()
    if query_tile is None:
        query_tile = 512 if vmem_cap >= 96 * 2 ** 20 else 256
    cap = max(8, (int(query_tile) // 8) * 8)
    # keep the (TQ, N) score tile + exp intermediates within ~1/4 of VMEM
    cap = min(cap, max(8, ((int(0.25 * vmem_cap) // max(N * 10, 1)) // 8) * 8))
    if N <= cap:
        TQ = ((N + 7) // 8) * 8
    else:
        TQ = 0
        for t in range(cap, 7, -8):
            if N % t == 0:
                TQ = t
                break
        if TQ == 0:
            TQ = cap                                           # fall back to padding
    Npad = ((N + TQ - 1) // TQ) * TQ
    if Npad != N:
        x1_b = jnp.pad(x1_b, ((0, 0), (0, Npad - N), (0, 0)))  # extra rows dropped later
    NQ = Npad // TQ

    # --- explicit VMEM budget (include intermediates; never the full chip) ---
    est = (2 * TQ * C1 * 2                                   # x1 tile (bf16, dbl-buf)
           + 2 * (Cip * N + N * Cip) * 2                     # phi^T + g caches (bf16, dbl-buf)
           + 2 * TQ * Coutp * 4                              # out tile (f32, dbl-buf)
           + 2 * 2 * (C1 * Cip + Cip * Coutp + C1 * Coutp)   # bf16 weights (dbl-buf)
           + 2 * Coutp * 4                                   # bias
           + TQ * N * 10                                     # f32 scores + exp temp + bf16 p
           + TQ * Cip * 10)                                  # theta / y intermediates
    vmem_limit = int(min(max(int(1.5 * est) + (8 << 20), 16 << 20),
                         int(0.75 * vmem_cap)))

    grid_spec = pltpu.PrefetchScalarGridSpec(
        num_scalar_prefetch=0,
        grid=(B, NQ),
        in_specs=[
            pl.BlockSpec((1, TQ, C1), lambda b, q: (b, q, 0)),
            # key-side caches constant in q -> re-DMA'd only when the batch changes
            pl.BlockSpec((1, Cip, N), lambda b, q: (b, 0, 0)),
            pl.BlockSpec((1, N, Cip), lambda b, q: (b, 0, 0)),
            pl.BlockSpec((C1, Cip), lambda b, q: (0, 0)),
            pl.BlockSpec((Cip, Coutp), lambda b, q: (0, 0)),
            pl.BlockSpec((C1, Coutp), lambda b, q: (0, 0)),
            pl.BlockSpec((1, Coutp), lambda b, q: (0, 0)),
        ],
        out_specs=pl.BlockSpec((1, TQ, Coutp), lambda b, q: (b, q, 0)),
    )

    out = pl.pallas_call(
        functools.partial(_attn_kernel, denom_col=denom_col,
                          exp_in_bf16=_exp_supports_bf16()),
        out_shape=jax.ShapeDtypeStruct((B, Npad, Coutp), f32),
        grid_spec=grid_spec,
        compiler_params=pltpu.CompilerParams(
            # no cross-iteration state: both axes may shard across TensorCores
            dimension_semantics=("parallel", "parallel"),
            vmem_limit_bytes=vmem_limit,
        ),
    )(x1_b, phi_t, g_b, wth_b, wy_b, wres_b, b_b)

    out = out[:, :N, :Cout]
    # back to NCHW to match the PyTorch module's output convention
    return out.reshape(B, H, W, Cout).transpose(0, 3, 1, 2)


# ----------------------------------------------------------------------------
# Pure-JAX reference (exact f32 math, mirrors the PyTorch module).
# ----------------------------------------------------------------------------
def reference_forward(x1_nchw, x2_nchw, params):
    B, C1, H, W = x1_nchw.shape
    _, C2, _, _ = x2_nchw.shape
    N = H * W
    x1 = jnp.transpose(x1_nchw, (0, 2, 3, 1)).reshape(B, N, C1)
    x2 = jnp.transpose(x2_nchw, (0, 2, 3, 1)).reshape(B, N, C2)
    wc = params["wc"]
    x1c = x1 @ wc if C1 == C2 else x1
    x2c = x2 @ wc
    theta = x1c @ params["wtheta"]
    phi = x2c @ params["wphi"]
    g = x2c @ params["wg"]
    f = jnp.einsum("bnc,bmc->bnm", theta, phi)
    p = jax.nn.softmax(f, axis=-1)
    y = jnp.einsum("bnm,bmc->bnc", p, g)
    wy = y @ params["ww"]
    eps = 1e-5
    scale = params["bn_gamma"] / jnp.sqrt(params["bn_var"] + eps)
    wy = wy * scale + (params["bn_beta"] - params["bn_mean"] * scale)
    z = wy + x1c
    out = z @ params["wout"] + params["bout"]
    return out.reshape(B, H, W, -1).transpose(0, 3, 1, 2)


# ----------------------------------------------------------------------------
# Deterministic parameter init (synthetic; shapes follow __init__).
# ----------------------------------------------------------------------------
def init_params(key, conv_planes, out_planes, mid_channels):
    inter = mid_channels // 2          # NONLocalBlock2D inter_channels default
    ks = jax.random.split(key, 11)
    s = 0.05
    return dict(
        wc=jax.random.normal(ks[0], (conv_planes, mid_channels), jnp.float32) * s,
        wtheta=jax.random.normal(ks[1], (mid_channels, inter), jnp.float32) * s,
        wphi=jax.random.normal(ks[2], (mid_channels, inter), jnp.float32) * s,
        wg=jax.random.normal(ks[3], (mid_channels, inter), jnp.float32) * s,
        ww=jax.random.normal(ks[4], (inter, mid_channels), jnp.float32) * s,
        bn_gamma=1.0 + 0.1 * jax.random.normal(ks[5], (mid_channels,), jnp.float32),
        bn_beta=0.1 * jax.random.normal(ks[6], (mid_channels,), jnp.float32),
        bn_mean=0.1 * jax.random.normal(ks[7], (mid_channels,), jnp.float32),
        bn_var=0.5 + jnp.abs(jax.random.normal(ks[8], (mid_channels,), jnp.float32)),
        wout=jax.random.normal(ks[9], (mid_channels, out_planes), jnp.float32) * s,
        bout=0.1 * jax.random.normal(ks[10], (out_planes,), jnp.float32),
    )


if __name__ == "__main__":
    key = jax.random.PRNGKey(0)
    k_p, k_x1, k_x2 = jax.random.split(key, 3)

    # small shapes: conv_planes=32, mid_channels=16, out_planes=8, 8x8 spatial
    B, conv_planes, mid_channels, out_planes, H, W = 2, 32, 16, 8, 8, 8
    params = init_params(k_p, conv_planes, out_planes, mid_channels)

    x1 = jax.random.normal(k_x1, (B, conv_planes, H, W), jnp.float32)
    x2 = jax.random.normal(k_x2, (B, conv_planes, H, W), jnp.float32)

    # query_tile=16 exercises the multi-tile (grid=(B, 4)) path at N=64.
    out = nonlocal_correlation_forward(x1, x2, params, query_tile=16)
    out = jax.block_until_ready(out)

    ref = jax.block_until_ready(reference_forward(x1, x2, params))
    assert out.shape == (B, out_planes, H, W), out.shape
    # bf16 activations/weights in all matmuls + approx reciprocal -> small drift
    assert jnp.allclose(out, ref, atol=3e-3, rtol=3e-3), "mismatch vs reference"

    print("KERNEL_OK")
</pallas_src>

<mosaic_0001>
module attributes {stable_mosaic.version = 11 : i64} {
  func.func @_attn_kernel(%arg0: i32, %arg1: i32, %arg2: memref<1x16x32xbf16, #tpu.memory_space<vmem>>, %arg3: memref<1x128x64xbf16, #tpu.memory_space<vmem>>, %arg4: memref<1x64x128xbf16, #tpu.memory_space<vmem>>, %arg5: memref<32x128xbf16, #tpu.memory_space<vmem>>, %arg6: memref<128x128xbf16, #tpu.memory_space<vmem>>, %arg7: memref<32x128xbf16, #tpu.memory_space<vmem>>, %arg8: memref<1x128xf32, #tpu.memory_space<vmem>>, %arg9: memref<1x16x128xf32, #tpu.memory_space<vmem>>) attributes {dimension_semantics = [#tpu.dimension_semantics<parallel>, #tpu.dimension_semantics<parallel>], iteration_bounds = array<i64: 2, 4>, scalar_prefetch = 0 : i64, scratch_operands = 0 : i64, tpu.core_type = #tpu.core_type<tc>, window_params = [{transform_indices = @transform_0, window_bounds = array<i64: 1, 16, 32>}, {transform_indices = @transform_1, window_bounds = array<i64: 1, 128, 64>}, {transform_indices = @transform_2, window_bounds = array<i64: 1, 64, 128>}, {pipeline_mode = #tpu.pipeline_mode<synchronous>, transform_indices = @transform_3, window_bounds = array<i64: 32, 128>}, {pipeline_mode = #tpu.pipeline_mode<synchronous>, transform_indices = @transform_4, window_bounds = array<i64: 128, 128>}, {pipeline_mode = #tpu.pipeline_mode<synchronous>, transform_indices = @transform_5, window_bounds = array<i64: 32, 128>}, {pipeline_mode = #tpu.pipeline_mode<synchronous>, transform_indices = @transform_6, window_bounds = array<i64: 1, 128>}, {transform_indices = @transform_7, window_bounds = array<i64: 1, 16, 128>}]} {
    %c0 = arith.constant 0 : index
    %c0_0 = arith.constant 0 : index
    %c0_1 = arith.constant 0 : index
    %0 = vector.load %arg2[%c0, %c0_0, %c0_1] : memref<1x16x32xbf16, #tpu.memory_space<vmem>>, vector<1x16x32xbf16>
    %1 = vector.shape_cast %0 : vector<1x16x32xbf16> to vector<16x32xbf16>
    %c0_2 = arith.constant 0 : index
    %c0_3 = arith.constant 0 : index
    %2 = vector.load %arg5[%c0_2, %c0_3] : memref<32x128xbf16, #tpu.memory_space<vmem>>, vector<32x128xbf16>
    %cst = arith.constant dense<0.000000e+00> : vector<16x128xf32>
    %3 = tpu.matmul %1, %2, %cst {dimension_numbers = #tpu.dot_dimension_numbers<[1], [0], [0], [1], [0, 0, 1, 1], [], []>} : vector<16x32xbf16>, vector<32x128xbf16>, vector<16x128xf32> -> vector<16x128xf32>
    %4 = arith.truncf %3 : vector<16x128xf32> to vector<16x128xbf16>
    %c0_4 = arith.constant 0 : index
    %c0_5 = arith.constant 0 : index
    %c0_6 = arith.constant 0 : index
    %5 = vector.load %arg3[%c0_4, %c0_5, %c0_6] : memref<1x128x64xbf16, #tpu.memory_space<vmem>>, vector<1x128x64xbf16>
    %6 = vector.shape_cast %5 : vector<1x128x64xbf16> to vector<128x64xbf16>
    %cst_7 = arith.constant dense<0.000000e+00> : vector<16x64xf32>
    %7 = tpu.matmul %4, %6, %cst_7 {dimension_numbers = #tpu.dot_dimension_numbers<[1], [0], [0], [1], [0, 0, 1, 1], [], []>} : vector<16x128xbf16>, vector<128x64xbf16>, vector<16x64xf32> -> vector<16x64xf32>
    %cst_8 = arith.constant dense<0xFF800000> : vector<16xf32>
    %8 = vector.multi_reduction <maximumf>, %7, %cst_8 [1] : vector<16x64xf32> to vector<16xf32>
    %9 = vector.shape_cast %8 : vector<16xf32> to vector<16x1xf32>
    %10 = vector.broadcast %9 : vector<16x1xf32> to vector<16x64xf32>
    %11 = arith.subf %7, %10 : vector<16x64xf32>
    %12 = math.exp %11 : vector<16x64xf32>
    %13 = arith.truncf %12 : vector<16x64xf32> to vector<16x64xbf16>
    %c0_9 = arith.constant 0 : index
    %c0_10 = arith.constant 0 : index
    %c0_11 = arith.constant 0 : index
    %14 = vector.load %arg4[%c0_9, %c0_10, %c0_11] : memref<1x64x128xbf16, #tpu.memory_space<vmem>>, vector<1x64x128xbf16>
    %15 = vector.shape_cast %14 : vector<1x64x128xbf16> to vector<64x128xbf16>
    %cst_12 = arith.constant dense<0.000000e+00> : vector<16x128xf32>
    %16 = tpu.matmul %13, %15, %cst_12 {dimension_numbers = #tpu.dot_dimension_numbers<[1], [0], [0], [1], [0, 0, 1, 1], [], []>} : vector<16x64xbf16>, vector<64x128xbf16>, vector<16x128xf32> -> vector<16x128xf32>
    %17 = vector.extract_strided_slice %16 {offsets = [0, 8], sizes = [16, 1], strides = [1, 1]} : vector<16x128xf32> to vector<16x1xf32>
    %18 = tpu.reciprocal %17 {approx = true} : vector<16x1xf32> -> vector<16x1xf32>
    %19 = vector.broadcast %18 : vector<16x1xf32> to vector<16x128xf32>
    %20 = arith.mulf %16, %19 : vector<16x128xf32>
    %21 = arith.truncf %20 : vector<16x128xf32> to vector<16x128xbf16>
    %c0_13 = arith.constant 0 : index
    %c0_14 = arith.constant 0 : index
    %22 = vector.load %arg6[%c0_13, %c0_14] : memref<128x128xbf16, #tpu.memory_space<vmem>>, vector<128x128xbf16>
    %cst_15 = arith.constant dense<0.000000e+00> : vector<16x128xf32>
    %23 = tpu.matmul %21, %22, %cst_15 {dimension_numbers = #tpu.dot_dimension_numbers<[1], [0], [0], [1], [0, 0, 1, 1], [], []>} : vector<16x128xbf16>, vector<128x128xbf16>, vector<16x128xf32> -> vector<16x128xf32>
    %c0_16 = arith.constant 0 : index
    %c0_17 = arith.constant 0 : index
    %24 = vector.load %arg7[%c0_16, %c0_17] : memref<32x128xbf16, #tpu.memory_space<vmem>>, vector<32x128xbf16>
    %cst_18 = arith.constant dense<0.000000e+00> : vector<16x128xf32>
    %25 = tpu.matmul %1, %24, %cst_18 {dimension_numbers = #tpu.dot_dimension_numbers<[1], [0], [0], [1], [0, 0, 1, 1], [], []>} : vector<16x32xbf16>, vector<32x128xbf16>, vector<16x128xf32> -> vector<16x128xf32>
    %26 = arith.addf %23, %25 : vector<16x128xf32>
    %c0_19 = arith.constant 0 : index
    %c0_20 = arith.constant 0 : index
    %27 = vector.load %arg8[%c0_19, %c0_20] : memref<1x128xf32, #tpu.memory_space<vmem>>, vector<1x128xf32>
    %28 = vector.broadcast %27 : vector<1x128xf32> to vector<16x128xf32>
    %29 = arith.addf %26, %28 : vector<16x128xf32>
    %c0_21 = arith.constant 0 : index
    %c0_22 = arith.constant 0 : index
    %c0_23 = arith.constant 0 : index
    %30 = vector.load %arg9[%c0_21, %c0_22, %c0_23] : memref<1x16x128xf32, #tpu.memory_space<vmem>>, vector<1x16x128xf32>
    %31 = vector.shape_cast %30 : vector<1x16x128xf32> to vector<16x128xf32>
    %32 = vector.shape_cast %29 : vector<16x128xf32> to vector<1x16x128xf32>
    tpu.vector_store %arg9[%c0_21, %c0_22, %c0_23], %32 {strides = array<i32>} : memref<1x16x128xf32, #tpu.memory_space<vmem>>, vector<1x16x128xf32>,
    return
  }
  func.func @transform_0(%arg0: i32, %arg1: i32) -> (i32, i32, i32) {
    %c0_i32 = arith.constant 0 : i32
    %c0_i32_0 = arith.constant 0 : i32
    return %arg0, %arg1, %c0_i32 : i32, i32, i32
  }
  func.func @transform_1(%arg0: i32, %arg1: i32) -> (i32, i32, i32) {
    %c0_i32 = arith.constant 0 : i32
    %c0_i32_0 = arith.constant 0 : i32
    %c0_i32_1 = arith.constant 0 : i32
    return %arg0, %c0_i32, %c0_i32_0 : i32, i32, i32
  }
  func.func @transform_2(%arg0: i32, %arg1: i32) -> (i32, i32, i32) {
    %c0_i32 = arith.constant 0 : i32
    %c0_i32_0 = arith.constant 0 : i32
    %c0_i32_1 = arith.constant 0 : i32
    return %arg0, %c0_i32, %c0_i32_0 : i32, i32, i32
  }
  func.func @transform_3(%arg0: i32, %arg1: i32) -> (i32, i32) {
    %c0_i32 = arith.constant 0 : i32
    %c0_i32_0 = arith.constant 0 : i32
    %c0_i32_1 = arith.constant 0 : i32
    return %c0_i32, %c0_i32_0 : i32, i32
  }
  func.func @transform_4(%arg0: i32, %arg1: i32) -> (i32, i32) {
    %c0_i32 = arith.constant 0 : i32
    %c0_i32_0 = arith.constant 0 : i32
    %c0_i32_1 = arith.constant 0 : i32
    return %c0_i32, %c0_i32_0 : i32, i32
  }
  func.func @transform_5(%arg0: i32, %arg1: i32) -> (i32, i32) {
    %c0_i32 = arith.constant 0 : i32
    %c0_i32_0 = arith.constant 0 : i32
    %c0_i32_1 = arith.constant 0 : i32
    return %c0_i32, %c0_i32_0 : i32, i32
  }
  func.func @transform_6(%arg0: i32, %arg1: i32) -> (i32, i32) {
    %c0_i32 = arith.constant 0 : i32
    %c0_i32_0 = arith.constant 0 : i32
    %c0_i32_1 = arith.constant 0 : i32
    return %c0_i32, %c0_i32_0 : i32, i32
  }
  func.func @transform_7(%arg0: i32, %arg1: i32) -> (i32, i32, i32) {
    %c0_i32 = arith.constant 0 : i32
    %c0_i32_0 = arith.constant 0 : i32
    return %arg0, %arg1, %c0_i32 : i32, i32, i32
  }
}

</mosaic_0001>

<bundles_post_ra>
// kernel: tpu_custom_call.1
= control target key start
LH: loop header
LB: loop body
LE: loop exit
PB: predicated region body
PF: predicated region fallthrough
CT: control target
= control target key end

     0   :  { %s1570_s0 = inlined_call_operand.vmem [shape: bf16[2,64,32], index: 0, kind: input, shape index: {}]   ;;  %s1571_s1 = inlined_call_operand.vmem [shape: bf16[2,128,64], index: 1, kind: input, shape index: {}]   ;;  %s1572_s2 = inlined_call_operand.vmem [shape: bf16[2,64,128], index: 2, kind: input, shape index: {}]   ;;  %s1573_s3 = inlined_call_operand.vmem [shape: bf16[32,128], index: 3, kind: input, shape index: {}]   ;;  %s1574_s4 = inlined_call_operand.vmem [shape: bf16[128,128], index: 4, kind: input, shape index: {}]   ;;  %s1575_s5 = inlined_call_operand.vmem [shape: bf16[32,128], index: 5, kind: input, shape index: {}]   ;;  %s1576_s6 = inlined_call_operand.vmem [shape: f32[1,128], index: 6, kind: input, shape index: {}]   ;;  %s1577_s7 = inlined_call_operand.hbm [shape: f32[2,64,128], index: 7, kind: output, shape index: {}]  }
   0x1   :  { %1579 = sst [smem:[#allocation6_spill]] %s1573_s3 }
   0x2   :  { %12 = vsyncpa [#allocation3], 0 }
   0x3   :  { %14 = vsyncpa [#allocation3 + $0x1], 0  ;;  %s1323_s24 = smov 0   ;;  %s1325_s25 = smov 0  }
   0x4   :  { %s1327_s26 = smov 0   ;;  %s1329_s27 = smov 0  }
   0x5   :  { %s1331_s28 = smov 0   ;;  %s1333_s29 = smov 0  }
   0x6   :  { %s1335_s30 = smov 0   ;;  %s1337_s8 = smov 0  }
   0x7 LB: > { %s923_s9 = sadd.s32 4294967295, %s1275_s8   ;;  %s924_s10 = sadd.s32 4294967294, %s1275_s8   ;;  %s1275_s8 = sphi %s1337_s8, %s20_s8   ;;  %s1271_s30 = sphi %s1335_s30, %s1591_s30   ;;  %s1267_s29 = sphi %s1333_s29, %s1590_s29   ;;  %s1263_s28 = sphi %s1331_s28, %s1589_s28   ;;  %s1259_s27 = sphi %s1329_s27, %s1588_s27   ;;  %s1255_s26 = sphi %s1327_s26, %s1587_s26   ;;  %s1251_s25 = sphi %s1325_s25, %s1586_s25   ;;  %s1247_s24 = sphi %s1323_s24, %s1585_s24  }
   0x8   : > { %s29_s11 = sadd.s32 1, %s1267_s29  ;;  %s32_s12 = sadd.s32 1, %s1271_s30 }
   0x9   : > { %p30_p0 = scmp.ge.s32.totalorder %s29_s11, 4  ;;  %p215_p1 = scmp.ne.s32.totalorder %s1255_s26, %s1251_s25 }
   0xa   : > { %p216_p2 = scmp.eq.s32.totalorder %s923_s9, 7  ;;  %p221_p5 = scmp.ne.s32.totalorder %s1251_s25, %s1247_s24 }
   0xb   : > { %s1593_s11 = smov (%p30_p0, %s29_s11), 0  ;;  %s1595_s12 = smov (!%p30_p0, %s32_s12), %s1271_s30 }
   0xc   : > { %s201_s13 = ssub.s32 %s1267_s29, %s1593_s11  ;;  %p1374_p3 = por %p216_p2, %p215_p1 }
   0xd   : > { %p34_p4 = scmp.ge.s32.totalorder %s1595_s12, 2  ;;  %p222_p6 = scmp.eq.s32.totalorder %s924_s10, 7 }
   0xe   : > { %p927_p7 = scmp.ge.s32.totalorder %s1275_s8, 1  ;;  %p281_p9 = scmp.lt.s32.totalorder %s1275_s8, 9 }
   0xf   : > { %s1597_s12 = smov (%p34_p4, %s1595_s12), 0  ;;  %p1383_p8 = por %p222_p6, %p221_p5 }
  0x10   : > { %1581 = sst [smem:[#allocation5_spill]] %s1597_s12  ;;  %s200_s16 = ssub.s32 %s1271_s30, %s1597_s12 }
  0x11   : > { %s205_s17 = sadd.s32 1, %s1255_s26  ;;  %s202_s18 = sor.u32 %s201_s13, %s200_s16 }
  0x12   : > { %p282_p10 = pnand %p927_p7, %p281_p9  ;;  %p203_p11 = scmp.eq.s32.totalorder %s202_s18, 0 }
  0x13   : > { %s1583_s3 = sld [smem:[#allocation6_spill]] (!%p282_p10)  ;;  %v1277_v1 = vmov (!%p282_p10), 0.0   ;;  %vm1278_vm0 = vmmov (!%p282_p10), 0   ;;  %s1405_s9 = sshll.u32 (!%p282_p10), %s1259_s27, 1  ;;  %vm372_vm1 = vcmask (!%p282_p10), 261120   ;;  %vm523_vm2 = vcmask (!%p282_p10), 523264  }
  0x14   : > { %s1392_s19 = scalar_select %p203_p11, %s1255_s26, %s205_s17  }
  0x15   : > { %285 = sbr.rel (%p282_p10) target bundleno = 1219 (0x4c3), region = 48  ;;  %1002 = vmatprep.subr.bf16.mxu0 (!%p282_p10), %v1277_v1  ;;  %1010 = vmatprep.subr.bf16.mxu1 (!%p282_p10), %v1277_v1  ;;  %p328_p12 = scmp.lt.s32.totalorder (!%p282_p10), %s1263_s28, 1  ;;  %v1279_v36 = vmov (!%p282_p10), 8   ;;  %v1163_v37 = vld [vmem:[%s1575_s5] sm:$0xff] (!%p282_p10)   ;;  %v1164_v38 = vld [vmem:[%s1575_s5 + $0x8] sm:$0xff] (!%p282_p10)   ;;  %v1167_v41 = vld [vmem:[%s1574_s4 + $0x10] sm:$0xff] (!%p282_p10)  }
  0x16   : > { %1006 = vmatprep.mubr.msk.bf16.mxu0 (!%p282_p10), %vm1278_vm0, %v1277_v1  ;;  %p330_p13 = scmp.lt.s32.totalorder (!%p282_p10), %s1405_s9, 7  ;;  %1026 = vmatprep.mubr.msk.bf16.mxu1 (!%p282_p10), %vm1278_vm0, %v1277_v1  ;;  %v1165_v39 = vld [vmem:[%s1574_s4] sm:$0xff] (!%p282_p10)   ;;  %v1166_v40 = vld [vmem:[%s1574_s4 + $0x8] sm:$0xff] (!%p282_p10)   ;;  %v1168_v42 = vld [vmem:[%s1574_s4 + $0x18] sm:$0xff] (!%p282_p10)  }
  0x17   : > { %1146 = vset.pattern.permute.xlu1 (!%p282_p10), %v1279_v36  ;;  %1147 = vset.pattern.permute.xlu0 (!%p282_p10), %v1279_v36  ;;  %v1169_v43 = vld [vmem:[%s1574_s4 + $0x20] sm:$0xff] (!%p282_p10)   ;;  %v1170_v44 = vld [vmem:[%s1574_s4 + $0x28] sm:$0xff] (!%p282_p10)   ;;  %v1171_v50 = vld [vmem:[%s1574_s4 + $0x30] sm:$0xff] (!%p282_p10)  }
  0x18   : > { %v1172_v52 = vld [vmem:[%s1574_s4 + $0x38] sm:$0xff] (!%p282_p10)   ;;  %v964_v63 = vld [vmem:[%s1576_s6] ss:$0 sm:$0xff] (!%p282_p10) }
  0x19   : > { %v1148_v0 = vld [vmem:[%s1583_s3] sm:$0xff] (!%p282_p10)   ;;  %v1149_v2 = vld [vmem:[%s1583_s3 + $0x8] sm:$0xff] (!%p282_p10)  }
  0x1a   : > { %1003 = vmatpush3.bf16.msra.mxu0 (!%p282_p10), %v1148_v0 }
  0x1b   : > { %1004 = vmatprep.subr.bf16.mxu0 (!%p282_p10), %v1277_v1 }
  0x1c   : > { %s329_s10 = scalar_select %p328_p12, %s1263_s28, 1 }
  0x1d   : > { %s331_s13 = scalar_select %p330_p13, %s1405_s9, 7 }
  0x1e   : > { %1005 = vmatpush3.bf16.msra.mxu0 %v1149_v2  ;;  %s930_s16 = sshll.u32 %s329_s10, 3  ;;  %s971_s17 = sshll.u32 %s329_s10, 6 }
  0x1f   : > { %s333_s18 = sadd.s32 %s930_s16, %s331_s13  ;;  %s1417_s27 = scalar_lea.vmem %s1571_s1, %s971_s17  ;;  %1042 = vmatprep.subr.bf16.mxu0 %v1277_v1 }
  0x20   : > { %s931_s22 = sshll.u32 %s333_s18, 2  ;;  %v1151_v3 = vld [vmem:[%s1417_s27] sm:$0xff]   ;;  %v1152_v5 = vld [vmem:[%s1417_s27 + $0x8] sm:$0xff]   ;;  %s972_s13 = sshll.u32 %s329_s10, 5  ;;  %v1153_v6 = vld [vmem:[%s1417_s27 + $0x10] sm:$0xff]  }
  0x21   : > { %s335_s12 = scalar_lea.vmem %s1570_s0, %s931_s22  ;;  %1011 = vmatpush3.bf16.msra.mxu1 %v1151_v3  ;;  %v1154_v7 = vld [vmem:[%s1417_s27 + $0x18] sm:$0xff]   ;;  %v1155_v8 = vld [vmem:[%s1417_s27 + $0x20] sm:$0xff]   ;;  %v1156_v9 = vld [vmem:[%s1417_s27 + $0x28] sm:$0xff]   ;;  %s967_s16 = sshll.u32 %s1263_s28, 3 }
  0x22   : > { %v1424_v4 = vld [vmem:[%s335_s12] sm:$0xff]   ;;  %1012 = vmatprep.subr.bf16.mxu1 %v1277_v1  ;;  %s1436_s12 = scalar_lea.vmem %s1572_s2, %s972_s13  ;;  %v1157_v10 = vld [vmem:[%s1417_s27 + $0x30] sm:$0xff]   ;;  %v1158_v11 = vld [vmem:[%s1417_s27 + $0x38] sm:$0xff]   ;;  %s324_s13 = sand.u32 1, %s1251_s25  }
  0x23   : > { %1007 = vmatmul.mubr.msk.bf16.vlgmr.msra.gmra.mrb[0].mxu0 %vm372_vm1, %v1424_v4  ;;  %v1159_v23 = vld [vmem:[%s1436_s12] sm:$0xff]   ;;  %v1160_v24 = vld [vmem:[%s1436_s12 + $0x8] sm:$0xff]   ;;  %v1161_v25 = vld [vmem:[%s1436_s12 + $0x10] sm:$0xff]   ;;  %s928_s3 = sshll.u32 %s324_s13, 4  ;;  %s1518_s22 = scalar_lea.sflag [#allocation3], %s324_s13 }
  0x24   : > { %1046 = vmatprep.mubr.msk.bf16.mxu0 %vm1278_vm0, %v1277_v1  ;;  %v1162_v26 = vld [vmem:[%s1436_s12 + $0x18] sm:$0xff]   ;;  %1043 = vmatpush3.bf16.msra.mxu0 %v1163_v37  ;;  %s814_s12 = sadd.s32 %s967_s16, %s1405_s9  ;;  %s326_s18 = scalar_lea.vmem [#allocation2], %s928_s3 }
  0x25   : > { %1013 = vmatpush3.bf16.msra.mxu1 %v1152_v5  ;;  %1044 = vmatprep.subr.bf16.mxu0 %v1277_v1  ;;  %s817_s20 = sshll.u32 %s326_s18, 4  ;;  %s968_s21 = sshll.u32 %s814_s12, 7  ;;  %s1511_s20 = int_to_ptr.vmem [resolvable:$true] %s817_s20 }
  0x26   : > { %1014 = vmatprep.subr.bf16.mxu1 %v1277_v1  ;;  %s1516_s27 = scalar_lea.hbm %s1577_s7, %s968_s21  ;;  %s1181_s23 = scalar_lea.vmem %s1511_s20, 256 }
  0x27   : > { %p1182_p0 = scmp.ne.s32.totalorder %s1511_s20, %s1181_s23  ;;  %s1280_s3 = smov [#allocation2]  }
  0x28   : > { %1045 = vmatpush3.bf16.msra.mxu0 %v1164_v38  ;;  %s1185_s16 = sshll.u32 %s1280_s3, 4  ;;  %s1186_s16 = int_to_ptr.vmem [resolvable:$false] %s1185_s16 }
  0x29   : > { %1015 = vmatpush3.bf16.msra.mxu1 %v1153_v6  ;;  %1050 = vmatprep.subr.bf16.mxu0 %v1277_v1  ;;  %p1183_p1 = pnand %p1182_p0, %p1374_p3  ;;  %s1187_s12 = scalar_lea.vmem %s1186_s16, 512 }
  0x2a   : > { %1016 = vmatprep.subr.bf16.mxu1 %v1277_v1  ;;  %p1188_p4 = scmp.lt.s32.totalorder %s1511_s20, %s1186_s16  ;;  %p1189_p5 = scmp.lt.s32.totalorder %s1187_s12, %s1181_s23 }
  0x2b   : > { %1047 = vmatmul.mubr.msk.bf16.vlgmr.msra.gmra.mrb[4].mxu0 %vm372_vm1, %v1424_v4  ;;  %p1184_p2 = pneg %p1183_p1 }
  0x2c   : > { %1051 = vmatpush3.bf16.msra.mxu0 %v1165_v39  ;;  %1066 = vmatprep.mubr.msk.bf16.mxu0 %vm1278_vm0, %v1277_v1  ;;  %p1190_p6 = por %p1189_p5, %p1188_p4 }
  0x2d   : > { %1017 = vmatpush3.bf16.msra.mxu1 %v1154_v7  ;;  %1052 = vmatprep.subr.bf16.mxu0 %v1277_v1 }
  0x2e   : > { %1018 = vmatprep.subr.bf16.mxu1 %v1277_v1  ;;  %p1191_p7 = pnand %p1190_p6, %p1184_p2 }
  0x30   : > { %1053 = vmatpush3.bf16.msra.mxu0 %v1166_v40 }
  0x31   : > { %1019 = vmatpush3.bf16.msra.mxu1 %v1155_v8  ;;  %1054 = vmatprep.subr.bf16.mxu0 %v1277_v1 }
  0x32   : > { %1020 = vmatprep.subr.bf16.mxu1 %v1277_v1 }
  0x34   : > { %1055 = vmatpush3.bf16.msra.mxu0 %v1167_v41 }
  0x35   : > { %1021 = vmatpush3.bf16.msra.mxu1 %v1156_v9  ;;  %1056 = vmatprep.subr.bf16.mxu0 %v1277_v1 }
  0x36   : > { %1022 = vmatprep.subr.bf16.mxu1 %v1277_v1 }
  0x38   : > { %1057 = vmatpush3.bf16.msra.mxu0 %v1168_v42 }
  0x39   : > { %1023 = vmatpush3.bf16.msra.mxu1 %v1157_v10  ;;  %1058 = vmatprep.subr.bf16.mxu0 %v1277_v1 }
  0x3a   : > { %1024 = vmatprep.subr.bf16.mxu1 %v1277_v1 }
  0x3c   : > { %1059 = vmatpush3.bf16.msra.mxu0 %v1169_v43 }
  0x3d   : > { %1025 = vmatpush3.bf16.msra.mxu1 %v1158_v11  ;;  %1060 = vmatprep.subr.bf16.mxu0 %v1277_v1 }
  0x3e   : > { %1030 = vmatprep.subr.bf16.mxu1 %v1277_v1 }
  0x40   : > { %1061 = vmatpush3.bf16.msra.mxu0 %v1170_v44 }
  0x41   : > { %1062 = vmatprep.subr.bf16.mxu0 %v1277_v1 }
  0x44   : > { %1063 = vmatpush3.bf16.msra.mxu0 %v1171_v50 }
  0x45   : > { %1064 = vmatprep.subr.bf16.mxu0 %v1277_v1 }
  0x48   : > { %1065 = vmatpush3.bf16.msra.mxu0 %v1172_v52 }
  0xf6   : > { %v410_v12 = vpop.f32.mrb[0].mxu0 }
  0xf7   : > { %v1008_v13 = vpop.f32.mrb[1].mxu0 }
  0xf8   : > { %v413_v14 = vpop.f32.mrb[2].mxu0 }
  0xf9   : > { %v417_v15 = vpack.c.bf16 %v413_v14, %v410_v12  ;;  %v1009_v16 = vpop.f32.mrb[3].mxu0 }
  0xfb   : > { %1027 = vmatmul.mubr.bf16.vlgmr.msra.gmra.mrb[0].mxu1 %v417_v15 }
  0xfc   : > { %1038 = vmatprep.mubr.msk.bf16.mxu1 %vm1278_vm0, %v1277_v1  ;;  %1031 = vmatpush3.bf16.msra.mxu1 %v1159_v23 }
  0xfd   : > { %1032 = vmatprep.subr.bf16.mxu1 %v1277_v1 }
  0xfe   : > { %v694_v53 = vpop.f32.mrb[4].mxu0 }
  0xff   : > { %v1048_v54 = vpop.f32.mrb[5].mxu0 }
 0x100   : > { %1033 = vmatpush3.bf16.msra.mxu1 %v1160_v24  ;;  %v697_v55 = vpop.f32.mrb[6].mxu0 }
 0x101   : > { %1034 = vmatprep.subr.bf16.mxu1 %v1277_v1  ;;  %v1049_v56 = vpop.f32.mrb[7].mxu0 }
 0x104   : > { %1035 = vmatpush3.bf16.msra.mxu1 %v1161_v25 }
 0x105   : > { %1036 = vmatprep.subr.bf16.mxu1 %v1277_v1 }
 0x108   : > { %1037 = vmatpush3.bf16.msra.mxu1 %v1162_v26 }
 0x1ce   : > { %v516_v17 = vpop.f32.mrb[0].mxu1 }
 0x1cf   : > { %v1028_v18 = vpop.f32.mrb[1].mxu1  ;;  %v524_v19 = vsel %vm523_vm2, %v516_v17, -inf }
 0x1d0   : > { %525 = vmax.xlane.f32.xlu0 %v524_v19  ;;  %v519_v20 = vpop.f32.mrb[2].mxu1 }
 0x1d1   : > { %v1029_v21 = vpop.f32.mrb[3].mxu1  ;;  %v527_v22 = vsel %vm523_vm2, %v519_v20, -inf }
 0x1d4   : > { %528 = vmax.xlane.f32.xlu0 %v527_v22 }
 0x25d   : > { %v526_v27 = vpop.xlane.xlu0 %525 }
 0x25e   : > { %v530_v28 = vsub.f32 %v516_v17, %v526_v27 }
 0x260   : > { %v532_v29 = vmul.f32 1.442695, %v530_v28 }
 0x261   : > { %v529_v30 = vpop.xlane.xlu0 %528 }
 0x262   : > { %v531_v31 = vsub.f32 %v519_v20, %v529_v30  ;;  %1173 = vpow2.f32 %v532_v29 }
 0x264   : > { %v534_v32 = vmul.f32 1.442695, %v531_v31 }
 0x266   : > { %1175 = vpow2.f32 %v534_v32 }
 0x26c   : > { %v1174_v33 = vpop.eup %1173 }
 0x270   : > { %v1176_v34 = vpop.eup %1175 }
 0x271   : > { %v536_v35 = vpack.c.bf16 %v1176_v34, %v1174_v33 }
 0x273   : > { %1039 = vmatmul.mubr.msk.bf16.vlgmr.msra.gmra.mrb[4].mxu1 %vm523_vm2, %v536_v35 }
 0x346   : > { %v606_v45 = vpop.f32.mrb[4].mxu1 }
 0x347   : > { %1177 = vrcp.f32 %v606_v45  ;;  %v1040_v46 = vpop.f32.mrb[5].mxu1 }
 0x348   : > { %v609_v47 = vpop.f32.mrb[6].mxu1 }
 0x349   : > { %v1041_v48 = vpop.f32.mrb[7].mxu1  ;;  %1179 = vrcp.f32 %v609_v47 }
 0x351   : > { %v1178_v49 = vpop.eup %1177 }
 0x352   : > { %617 = vperm.xlu1 %1146, %v1178_v49  }
 0x353   : > { %v1180_v51 = vpop.eup %1179 }
 0x356   : > { %622 = vperm.xlu1 %1146, %v1180_v51  }
 0x3d1   : > { %v618_v57 = vpop.permute.xlu1 %617 }
 0x3d2   : > { %v625_v59 = vmul.f32 %v618_v57, %v606_v45 }
 0x3d5   : > { %v623_v58 = vpop.permute.xlu1 %622 }
 0x3d6   : > { %v626_v60 = vmul.f32 %v623_v58, %v609_v47 }
 0x3d8   : > { %v627_v61 = vpack.c.bf16 %v626_v60, %v625_v59 }
 0x3da   : > { %1067 = vmatmul.mubr.bf16.vlgmr.msra.gmra.mrb[8].mxu0 %v627_v61 }
 0x4ad   : > { %v783_v62 = vpop.f32.mrb[8].mxu0 }
 0x4ae   : > { %v784_v0 = vadd.f32 %v783_v62, %v694_v53  ;;  %v1068_v1 = vpop.f32.mrb[9].mxu0 }
 0x4af   : > { %v786_v2 = vpop.f32.mrb[10].mxu0 }
 0x4b0   : > { %v797_v3 = vadd.f32 %v964_v63, %v784_v0  ;;  %v787_v4 = vadd.f32 %v786_v2, %v697_v55  ;;  %v1069_v5 = vpop.f32.mrb[11].mxu0 }
 0x4b2   : > { %799 = vst [vmem:[%s326_s18] sm:$0xff] %v797_v3  ;;  %v798_v6 = vadd.f32 %v964_v63, %v787_v4 }
 0x4b4   : > { %800 = vst [vmem:[%s326_s18 + $0x8] sm:$0xff] %v798_v6 }
 0x4b5   : > { %1194 = shalt.err (!%p1191_p7)
}
 0x4b6   : > { %s1195_s13 = scalar_lea.hbm %s1516_s27, 256  ;;  %s1199_s18 = scalar_lea.hbm %s1577_s7, 2048 }
 0x4b7   : > { %p1196_p9 = scmp.ne.s32.totalorder %s1516_s27, %s1195_s13  ;;  %p1200_p12 = scmp.lt.u32.totalorder %s1516_s27, %s1577_s7 }
 0x4b8   : > { %p1201_p13 = scmp.lt.u32.totalorder %s1199_s18, %s1195_s13  ;;  %p1203_p1 = scmp.lt.u32.totalorder %s1195_s13, %s1516_s27 }
 0x4b9   : > { %p1197_p10 = pnand %p1196_p9, %p1374_p3 }
 0x4ba   : > { %p1202_p0 = por %p1201_p13, %p1200_p12 }
 0x4bb   : > { %p1198_p11 = pneg %p1197_p10 }
 0x4bc   : > { %p1204_p2 = por %p1203_p1, %p1202_p0 }
 0x4be   : > { %p1205_p4 = pnand %p1204_p2, %p1198_p11 }
 0x4c0   : > { %1208 = shalt.err (!%p1205_p4)
}
 0x4c1   : > { %s1281_s9 = smov 128   ;;  %s1282_s23 = smov 8  }
 0x4c2   : > { %1070 = dma.vmem_to_hbm [thread:$0]  (%p1374_p3), %s1511_s20, 256, %s1516_s27, %s1518_s22, %s1281_s9, %s1281_s9, %s1282_s23  }
 0x4c3 PF: > { %p1076_p5 = scmp.ge.s32.totalorder %s1275_s8, 2  ;;  %s832_s3 = sand.u32 1, %s1247_s24  }
 0x4c4   : > { %s833_s16 = scalar_lea.sflag [#allocation3], %s832_s3 }
 0x4c5   : > { %p1073_p6 = pnand %p1076_p5, %p1383_p8 }
 0x4c7   : > { %1242 = dma.done.wait (!%p1073_p6), %s833_s16, 256  }
 0x4c8   : > { %1244 = vsyncadd (!%p1073_p6), %s833_s16, 4294967040  ;;  %s20_s8 = sadd.s32 1, %s1275_s8   ;;  %s1584_s14 = sld [smem:[#allocation5_spill]] }
 0x4c9   : > { %p17_p7 = scmp.ge.s32.totalorder %s20_s8, 10   ;;  %s1585_s24 = smov %s1251_s25 }
 0x4ca   : > { %s1586_s25 = smov %s1255_s26  ;;  %s1587_s26 = smov %s1392_s19 }
 0x4cb   : > { %s1588_s27 = smov %s1267_s29  ;;  %s1589_s28 = smov %s1271_s30 }
 0x4cc   : > { %s1590_s29 = smov %s1593_s11  ;;  %19 = sbr.rel (!%p17_p7) target bundleno = 7 (0x7), region = 89 }
 0x4ce   : > { %s1591_s30 = smov %s1584_s14 }
 0x4d3   :  { %838 = vsyncpa [#allocation3], 1 }
 0x4d4   :  { %840 = vsyncpa [#allocation3 + $0x1], 1 }

</bundles_post_ra>
